<compile_context>
chip_gen: v5e
topology: v5e:2x2
jax: 0.10.0
libtpu: 0.0.40
codegen_flags: <defaults>
</compile_context>

<pallas_src>
import functools

import jax
import jax.numpy as jnp
import numpy as np
from jax.experimental import pallas as pl
from jax.experimental.pallas import tpu as pltpu

_LANE = 128


def _round_up(x, m):
    return (x + m - 1) // m * m


def _pick_lane_tile(seq_len, hidden, batch):
    """Choose the hidden-dim (lane) tile and the number of H tiles."""
    if hidden % _LANE != 0:
        # Full-H blocks are always legal (block dim == array dim); a small H
        # simply underfills the lanes and keeps the wrapper copy-free.
        # TODO(synk): for large non-128-multiple H, padding H and tiling would
        # restore lane-dense stores at the cost of one wrapper pad copy.
        return hidden, 1
    # Per-grid-step double-buffered blocks cost ~24*T*tH bytes; target ~16 MiB
    # so larger T automatically gets narrower lane tiles (and vice versa).
    budget = 16 << 20
    th = (budget // (24 * max(seq_len, 1))) // _LANE * _LANE
    th = int(max(_LANE, min(2048, th, hidden)))
    while hidden % th != 0:
        th -= _LANE
    n_h = hidden // th
    # v7x has 2 TensorCores sharing the grid: make sure there are >= 2 steps.
    if batch * n_h < 2 and th % (2 * _LANE) == 0:
        th //= 2
        n_h = hidden // th
    return th, n_h


def _dft_bases(seq_len, f_pad, dtype):
    """Real-DFT bases: stacked forward A=[Ar;Ai] (2Fp,T), inverse Br/Bi (T,Fp)."""
    n = seq_len
    f = n // 2 + 1
    t = np.arange(n)[None, :]
    k = np.arange(f)[:, None]
    ang = 2.0 * np.pi * k * t / n                        # (F, T)

    # rfft, norm='forward' (scale 1/n):  [Xr; Xi] = A @ x
    a = np.zeros((2 * f_pad, n), np.float32)
    a[:f] = np.cos(ang) / n
    a[f_pad:f_pad + f] = -np.sin(ang) / n

    # irfft, norm='forward' (no extra scale): y = Br @ Yr + Bi @ Yi
    # alpha = 1 for the DC and (even-n) Nyquist bins, 2 otherwise.
    alpha = np.full((f, 1), 2.0)
    alpha[0, 0] = 1.0
    if n % 2 == 0:
        alpha[-1, 0] = 1.0
    br = np.zeros((n, f_pad), np.float32)
    bi = np.zeros((n, f_pad), np.float32)
    br[:, :f] = (alpha * np.cos(ang)).T
    bi[:, :f] = (-alpha * np.sin(ang)).T
    return (jnp.asarray(a, dtype), jnp.asarray(br, dtype), jnp.asarray(bi, dtype))


def _filter_kernel(x_ref, a_ref, br_ref, bi_ref, wr_ref, wi_ref, o_ref, *,
                   f_pad, compute_dtype):
    # x block: (1, T, tH) float32 -> (T, tH) bf16 for the MXU.
    x = x_ref[0].astype(compute_dtype)

    # Forward rFFT (norm='forward'): one stacked matmul -> [Xr; Xi].
    xf = jnp.dot(a_ref[...], x, preferred_element_type=jnp.float32)   # (2Fp, tH)
    xr = xf[:f_pad]
    xi = xf[f_pad:]

    # Complex multiply with the learned filter weight (kept float32).
    wr = wr_ref[...]
    wi = wi_ref[...]
    yr = xr * wr - xi * wi
    yi = xr * wi + xi * wr

    # Inverse rFFT (norm='forward'): two matmuls, no concat / extra copies.
    y = jnp.dot(br_ref[...], yr.astype(compute_dtype),
                preferred_element_type=jnp.float32)
    y = y + jnp.dot(bi_ref[...], yi.astype(compute_dtype),
                    preferred_element_type=jnp.float32)

    o_ref[0] = y.astype(o_ref.dtype)


@functools.partial(jax.jit, static_argnames=("seq_len",))
def filter_layer(x, complex_weight, *, seq_len):
    """Pallas implementation of FilterLayer.forward (eval mode).

    x:              (B, T_in, H) float32
    complex_weight: (1, seq_len//2+1, H, 2) float32 (real/imag in last dim)
    """
    compute_dtype = jnp.bfloat16

    B, T_in, H = x.shape
    T = seq_len
    F = T // 2 + 1
    Fp = _round_up(F, 8)
    assert complex_weight.shape == (1, F, H, 2)

    # torch.fft.rfft(n=seq_len, dim=1) zero-pads / truncates the seq axis.
    if T_in < T:
        x = jnp.pad(x, ((0, 0), (0, T - T_in), (0, 0)))
    elif T_in > T:
        x = x[:, :T, :]

    tH, n_h = _pick_lane_tile(T, H, B)

    # Learned weight: (Fp, H) real/imag planes in float32 (NOT batch-replicated;
    # padding F -> Fp keeps the spectrum sublane-aligned, padded bins are zero).
    wr = jnp.pad(complex_weight[0, :, :, 0], ((0, Fp - F), (0, 0)))
    wi = jnp.pad(complex_weight[0, :, :, 1], ((0, Fp - F), (0, 0)))

    # NOTE(accuracy): bf16 bases + f32 accumulation; if relative error at very
    # large seq_len exceeds requirements, keep the forward basis in float32.
    a_mat, br_mat, bi_mat = _dft_bases(T, Fp, compute_dtype)

    # Single-buffer the constant-index DFT bases only when they are big enough
    # to matter (large T on v7x's 64 MiB VMEM); tiny bases keep the default.
    base_bytes = 8 * Fp * T                           # A + Br + Bi in bf16
    single_buffer_bases = base_bytes > (8 << 20)

    def base_spec(shape):
        if single_buffer_bases:
            return pl.BlockSpec(shape, lambda j, b: (0, 0),
                                pipeline_mode=pl.Buffered(1))
        return pl.BlockSpec(shape, lambda j, b: (0, 0))

    kernel = functools.partial(_filter_kernel, f_pad=Fp,
                               compute_dtype=compute_dtype)

    # Advisory cost estimate (2 stacked matmuls + complex multiply).
    cols = B * n_h * tH
    flops = int((8 * Fp * T + 6 * Fp) * cols)
    bytes_accessed = int(8 * T * cols          # x read + out write (f32)
                         + 8 * Fp * H          # wr + wi (f32), once per H tile
                         + base_bytes)         # bf16 bases, DMA'd once

    # VMEM: double-buffered per-step blocks + resident bases + f32 temporaries
    # (xf / yr / yi intermediates that the previous estimate ignored).
    blk_bytes = 2 * (8 * T * tH + 8 * Fp * tH)
    base_vmem = (1 if single_buffer_bases else 2) * base_bytes
    internal = 24 * Fp * tH + 6 * T * tH
    est_vmem = blk_bytes + base_vmem + internal
    try:
        phys_vmem = int(pltpu.get_tpu_info().vmem_capacity_bytes)
    except Exception:                      # conservative fallback
        phys_vmem = 64 << 20
    cap = max(32 << 20, min(phys_vmem * 3 // 4, 100 << 20))
    vmem_limit = int(min(cap, max(32 << 20, 3 * est_vmem // 2)))

    out = pl.pallas_call(
        kernel,
        out_shape=jax.ShapeDtypeStruct((B, T, H), x.dtype),
        grid_spec=pltpu.PrefetchScalarGridSpec(
            num_scalar_prefetch=0,
            grid=(n_h, B),                   # H tile is the SLOW axis so the
            in_specs=[                       # weight block is reused across B
                pl.BlockSpec((1, T, tH), lambda j, b: (b, 0, j)),    # x
                base_spec((2 * Fp, T)),                              # A=[Ar;Ai]
                base_spec((T, Fp)),                                  # Br
                base_spec((T, Fp)),                                  # Bi
                pl.BlockSpec((Fp, tH), lambda j, b: (0, j)),         # Wr
                pl.BlockSpec((Fp, tH), lambda j, b: (0, j)),         # Wi
            ],
            out_specs=pl.BlockSpec((1, T, tH), lambda j, b: (b, 0, j)),
        ),
        compiler_params=pltpu.CompilerParams(
            dimension_semantics=("parallel", "parallel"),
            vmem_limit_bytes=vmem_limit),
        cost_estimate=pl.CostEstimate(flops=flops, transcendentals=0,
                                      bytes_accessed=bytes_accessed),
    )(x, a_mat, br_mat, bi_mat, wr, wi)

    # Crop the sequence back to the input length (matches the torch slice).
    out = out[:, :min(T_in, T), :]
    # TODO(synk): nn.Dropout(0.1) is identity in eval mode; training-mode
    # stochastic dropout is not implemented here.
    return out


def _reference(x, complex_weight, seq_len):
    """Pure-JAX reference using jnp.fft, mirroring the PyTorch forward."""
    w = complex_weight[..., 0] + 1j * complex_weight[..., 1]       # (1, F, H)
    xf = jnp.fft.rfft(x, n=seq_len, axis=1, norm="forward")
    y = jnp.fft.irfft(xf * w, n=seq_len, axis=1, norm="forward")
    return y[:, :min(x.shape[1], seq_len), :]


if __name__ == "__main__":
    batch, seq_len, hidden = 2, 8, 32

    key = jax.random.PRNGKey(0)
    kx, kw = jax.random.split(key)
    x = jax.random.normal(kx, (batch, seq_len, hidden), dtype=jnp.float32)
    # deterministic stand-in for torch.randn(1, seq_len//2+1, hidden, 2)
    complex_weight = jax.random.normal(
        kw, (1, seq_len // 2 + 1, hidden, 2), dtype=jnp.float32)

    out = filter_layer(x, complex_weight, seq_len=seq_len)
    out = jax.block_until_ready(out)

    ref = _reference(x, complex_weight, seq_len)
    out_np = np.asarray(out, dtype=np.float64)
    ref_np = np.asarray(ref, dtype=np.float64)

    # bf16 bases/activations with f32 accumulation: allow bf16-level error,
    # and additionally require tight relative-L2 agreement.
    np.testing.assert_allclose(out_np, ref_np, rtol=1e-1, atol=1e-1)
    rel_err = np.linalg.norm(out_np - ref_np) / np.linalg.norm(ref_np)
    assert rel_err < 2e-2, f"relative L2 error too large: {rel_err}"
    print("KERNEL_OK")
</pallas_src>

<mosaic_0001>
module attributes {stable_mosaic.version = 11 : i64} {
  func.func @_filter_kernel(%arg0: i32, %arg1: i32, %arg2: memref<1x8x32xf32, #tpu.memory_space<vmem>>, %arg3: memref<16x8xbf16, #tpu.memory_space<vmem>>, %arg4: memref<8x8xbf16, #tpu.memory_space<vmem>>, %arg5: memref<8x8xbf16, #tpu.memory_space<vmem>>, %arg6: memref<8x32xf32, #tpu.memory_space<vmem>>, %arg7: memref<8x32xf32, #tpu.memory_space<vmem>>, %arg8: memref<1x8x32xf32, #tpu.memory_space<vmem>>) attributes {dimension_semantics = [#tpu.dimension_semantics<parallel>, #tpu.dimension_semantics<parallel>], iteration_bounds = array<i64: 1, 2>, scalar_prefetch = 0 : i64, scratch_operands = 0 : i64, tpu.core_type = #tpu.core_type<tc>, window_params = [{transform_indices = @transform_0, window_bounds = array<i64: 1, 8, 32>}, {pipeline_mode = #tpu.pipeline_mode<synchronous>, transform_indices = @transform_1, window_bounds = array<i64: 16, 8>}, {pipeline_mode = #tpu.pipeline_mode<synchronous>, transform_indices = @transform_2, window_bounds = array<i64: 8, 8>}, {pipeline_mode = #tpu.pipeline_mode<synchronous>, transform_indices = @transform_3, window_bounds = array<i64: 8, 8>}, {transform_indices = @transform_4, window_bounds = array<i64: 8, 32>}, {transform_indices = @transform_5, window_bounds = array<i64: 8, 32>}, {transform_indices = @transform_6, window_bounds = array<i64: 1, 8, 32>}]} {
    %c0 = arith.constant 0 : index
    %c0_0 = arith.constant 0 : index
    %c0_1 = arith.constant 0 : index
    %0 = vector.load %arg2[%c0, %c0_0, %c0_1] : memref<1x8x32xf32, #tpu.memory_space<vmem>>, vector<1x8x32xf32>
    %1 = vector.shape_cast %0 : vector<1x8x32xf32> to vector<8x32xf32>
    %2 = arith.truncf %1 : vector<8x32xf32> to vector<8x32xbf16>
    %c0_2 = arith.constant 0 : index
    %c0_3 = arith.constant 0 : index
    %3 = vector.load %arg3[%c0_2, %c0_3] : memref<16x8xbf16, #tpu.memory_space<vmem>>, vector<16x8xbf16>
    %cst = arith.constant dense<0.000000e+00> : vector<16x32xf32>
    %4 = tpu.matmul %3, %2, %cst {dimension_numbers = #tpu.dot_dimension_numbers<[1], [0], [0], [1], [0, 0, 1, 1], [], []>} : vector<16x8xbf16>, vector<8x32xbf16>, vector<16x32xf32> -> vector<16x32xf32>
    %5 = vector.extract_strided_slice %4 {offsets = [0, 0], sizes = [8, 32], strides = [1, 1]} : vector<16x32xf32> to vector<8x32xf32>
    %6 = vector.extract_strided_slice %4 {offsets = [8, 0], sizes = [8, 32], strides = [1, 1]} : vector<16x32xf32> to vector<8x32xf32>
    %c0_4 = arith.constant 0 : index
    %c0_5 = arith.constant 0 : index
    %7 = vector.load %arg6[%c0_4, %c0_5] : memref<8x32xf32, #tpu.memory_space<vmem>>, vector<8x32xf32>
    %c0_6 = arith.constant 0 : index
    %c0_7 = arith.constant 0 : index
    %8 = vector.load %arg7[%c0_6, %c0_7] : memref<8x32xf32, #tpu.memory_space<vmem>>, vector<8x32xf32>
    %9 = arith.mulf %5, %7 : vector<8x32xf32>
    %10 = arith.mulf %6, %8 : vector<8x32xf32>
    %11 = arith.subf %9, %10 : vector<8x32xf32>
    %12 = arith.mulf %5, %8 : vector<8x32xf32>
    %13 = arith.mulf %6, %7 : vector<8x32xf32>
    %14 = arith.addf %12, %13 : vector<8x32xf32>
    %c0_8 = arith.constant 0 : index
    %c0_9 = arith.constant 0 : index
    %15 = vector.load %arg4[%c0_8, %c0_9] : memref<8x8xbf16, #tpu.memory_space<vmem>>, vector<8x8xbf16>
    %16 = arith.truncf %11 : vector<8x32xf32> to vector<8x32xbf16>
    %cst_10 = arith.constant dense<0.000000e+00> : vector<8x32xf32>
    %17 = tpu.matmul %15, %16, %cst_10 {dimension_numbers = #tpu.dot_dimension_numbers<[1], [0], [0], [1], [0, 0, 1, 1], [], []>} : vector<8x8xbf16>, vector<8x32xbf16>, vector<8x32xf32> -> vector<8x32xf32>
    %c0_11 = arith.constant 0 : index
    %c0_12 = arith.constant 0 : index
    %18 = vector.load %arg5[%c0_11, %c0_12] : memref<8x8xbf16, #tpu.memory_space<vmem>>, vector<8x8xbf16>
    %19 = arith.truncf %14 : vector<8x32xf32> to vector<8x32xbf16>
    %cst_13 = arith.constant dense<0.000000e+00> : vector<8x32xf32>
    %20 = tpu.matmul %18, %19, %cst_13 {dimension_numbers = #tpu.dot_dimension_numbers<[1], [0], [0], [1], [0, 0, 1, 1], [], []>} : vector<8x8xbf16>, vector<8x32xbf16>, vector<8x32xf32> -> vector<8x32xf32>
    %21 = arith.addf %17, %20 : vector<8x32xf32>
    %c0_14 = arith.constant 0 : index
    %c0_15 = arith.constant 0 : index
    %c0_16 = arith.constant 0 : index
    %22 = vector.load %arg8[%c0_14, %c0_15, %c0_16] : memref<1x8x32xf32, #tpu.memory_space<vmem>>, vector<1x8x32xf32>
    %23 = vector.shape_cast %22 : vector<1x8x32xf32> to vector<8x32xf32>
    %24 = vector.shape_cast %21 : vector<8x32xf32> to vector<1x8x32xf32>
    tpu.vector_store %arg8[%c0_14, %c0_15, %c0_16], %24 {strides = array<i32>} : memref<1x8x32xf32, #tpu.memory_space<vmem>>, vector<1x8x32xf32>,
    return
  }
  func.func @transform_0(%arg0: i32, %arg1: i32) -> (i32, i32, i32) {
    %c0_i32 = arith.constant 0 : i32
    %c0_i32_0 = arith.constant 0 : i32
    return %arg1, %c0_i32, %arg0 : i32, i32, i32
  }
  func.func @transform_1(%arg0: i32, %arg1: i32) -> (i32, i32) {
    %c0_i32 = arith.constant 0 : i32
    %c0_i32_0 = arith.constant 0 : i32
    %c0_i32_1 = arith.constant 0 : i32
    return %c0_i32, %c0_i32_0 : i32, i32
  }
  func.func @transform_2(%arg0: i32, %arg1: i32) -> (i32, i32) {
    %c0_i32 = arith.constant 0 : i32
    %c0_i32_0 = arith.constant 0 : i32
    %c0_i32_1 = arith.constant 0 : i32
    return %c0_i32, %c0_i32_0 : i32, i32
  }
  func.func @transform_3(%arg0: i32, %arg1: i32) -> (i32, i32) {
    %c0_i32 = arith.constant 0 : i32
    %c0_i32_0 = arith.constant 0 : i32
    %c0_i32_1 = arith.constant 0 : i32
    return %c0_i32, %c0_i32_0 : i32, i32
  }
  func.func @transform_4(%arg0: i32, %arg1: i32) -> (i32, i32) {
    %c0_i32 = arith.constant 0 : i32
    %c0_i32_0 = arith.constant 0 : i32
    return %c0_i32, %arg0 : i32, i32
  }
  func.func @transform_5(%arg0: i32, %arg1: i32) -> (i32, i32) {
    %c0_i32 = arith.constant 0 : i32
    %c0_i32_0 = arith.constant 0 : i32
    return %c0_i32, %arg0 : i32, i32
  }
  func.func @transform_6(%arg0: i32, %arg1: i32) -> (i32, i32, i32) {
    %c0_i32 = arith.constant 0 : i32
    %c0_i32_0 = arith.constant 0 : i32
    return %arg1, %c0_i32, %arg0 : i32, i32, i32
  }
}

</mosaic_0001>

<bundles_post_ra>
// kernel: filter_layer.1
= control target key start
LH: loop header
LB: loop body
LE: loop exit
PB: predicated region body
PF: predicated region fallthrough
CT: control target
= control target key end

     0   :  { %11 = vsyncpa [#allocation3], 0  ;;  %s817_s0 = inlined_call_operand.vmem [shape: f32[2,8,32], index: 0, kind: input, shape index: {}]   ;;  %s818_s1 = inlined_call_operand.vmem [shape: bf16[16,8], index: 1, kind: input, shape index: {}]   ;;  %s819_s2 = inlined_call_operand.vmem [shape: bf16[8,8], index: 2, kind: input, shape index: {}]   ;;  %s820_s3 = inlined_call_operand.vmem [shape: bf16[8,8], index: 3, kind: input, shape index: {}]   ;;  %s821_s4 = inlined_call_operand.vmem [shape: f32[8,32], index: 4, kind: input, shape index: {}]   ;;  %s822_s5 = inlined_call_operand.vmem [shape: f32[8,32], index: 5, kind: input, shape index: {}]   ;;  %s823_s6 = inlined_call_operand.hbm [shape: f32[2,8,32], index: 6, kind: output, shape index: {}]  }
   0x1   :  { %13 = vsyncpa [#allocation3 + $0x1], 0  ;;  %s699_s21 = smov 0   ;;  %s701_s22 = smov 0  }
   0x2   :  { %s703_s23 = smov 0   ;;  %s705_s24 = smov 0  }
   0x3   :  { %s707_s25 = smov 0   ;;  %s709_s26 = smov 0  }
   0x4 LB: > { %s508_s27 = sadd.s32 4294967295, %s662_s26   ;;  %s509_s28 = sadd.s32 4294967294, %s662_s26   ;;  %s662_s26 = sphi %s709_s26, %s19_s26   ;;  %s658_s25 = sphi %s707_s25, %s830_s25   ;;  %s654_s24 = sphi %s705_s24, %s829_s24   ;;  %s650_s23 = sphi %s703_s23, %s828_s23   ;;  %s646_s22 = sphi %s701_s22, %s827_s22   ;;  %s642_s21 = sphi %s699_s21, %s826_s21  }
   0x5   : > { %s28_s29 = sadd.s32 1, %s658_s25  ;;  %s183_s30 = sadd.s32 1, %s650_s23 }
   0x6   : > { %p29_p0 = scmp.ge.s32.totalorder %s28_s29, 2  ;;  %p193_p1 = scmp.ne.s32.totalorder %s650_s23, %s646_s22 }
   0x7   : > { %p194_p2 = scmp.eq.s32.totalorder %s508_s27, 1  ;;  %p199_p3 = scmp.ne.s32.totalorder %s646_s22, %s642_s21 }
   0x8   : > { %s832_s29 = smov (%p29_p0, %s28_s29), 0  ;;  %p200_p5 = scmp.eq.s32.totalorder %s509_s28, 1 }
   0x9   : > { %p739_p4 = por %p194_p2, %p193_p1  ;;  %s178_s8 = ssub.s32 %s658_s25, %s832_s29 }
   0xa   : > { %p514_p6 = scmp.ge.s32.totalorder %s662_s26, 1  ;;  %p181_p7 = scmp.eq.s32.totalorder %s178_s8, 0 }
   0xb   : > { %p746_p8 = por %p200_p5, %p199_p3  ;;  %p251_p9 = scmp.lt.s32.totalorder %s662_s26, 3 }
   0xc   : > { %s752_s10 = scalar_select %p181_p7, %s650_s23, %s183_s30  }
   0xd   : > { %p252_p10 = pnand %p514_p6, %p251_p9 }
   0xe   : > { %p291_p11 = scmp.lt.s32.totalorder (!%p252_p10), %s654_s24, 1  ;;  %s525_s13 = sshll.u32 (!%p252_p10), %s654_s24, 3 }
   0xf   : > { %255 = sbr.rel (%p252_p10) target bundleno = 315 (0x13b), region = 44  ;;  %s402_s17 = scalar_lea.hbm (!%p252_p10), %s823_s6, %s525_s13 }
  0x10   : > { %s406_s20 = sshll.u32 (!%p252_p10), %s402_s17, 4  ;;  %s407_s20 = int_to_ptr.hbm [resolvable:$true] %s406_s20 }
  0x11   : > { %s598_s28 = sshra.s32 (!%p252_p10), %s407_s20, 4  ;;  %s599_s28 = int_to_ptr.hbm [resolvable:$true] %s598_s28 }
  0x12   : > { %p605_p1 = scmp.lt.s32.totalorder (!%p252_p10), %s599_s28, %s823_s6 }
  0x14   : > { %s292_s11 = scalar_select %p291_p11, %s654_s24, 1  ;;  %vm320_vm0 = vcmask 1043456   ;;  %v528_v3 = vld [vmem:[%s818_s1] sm:$0xff]  ;;  %vm316_vm1 = vcmask 64512   ;;  %vm388_vm2 = vcmask 261120  }
  0x15   : > { %v338_v5 = vld [vmem:[%s821_s4] sm:$0xff]  ;;  %s600_s24 = scalar_lea.hbm %s599_s28, 8 }
  0x16   : > { %s516_s12 = sshll.u32 %s292_s11, 3  ;;  %v339_v6 = vld [vmem:[%s822_s5] sm:$0xff]  ;;  %p601_p12 = scmp.ne.s32.totalorder %s599_s28, %s600_s24 }
  0x17   : > { %s297_s15 = scalar_lea.vmem %s817_s0, %s516_s12  ;;  %v348_v18 = vld [vmem:[%s820_s3] sm:$0xf]  ;;  %s288_s12 = sand.u32 1, %s646_s22  }
  0x18   : > { %v307_v0 = vld [vmem:[%s297_s15] sm:$0xff]  ;;  %s515_s14 = sshll.u32 %s288_s12, 3  ;;  %s391_s27 = scalar_lea.sflag [#allocation3], %s288_s12 }
  0x19   : > { %v308_v1 = vpack.c.bf16 %v307_v0, %v307_v0  ;;  %v346_v19 = vld [vmem:[%s819_s2] sm:$0xf]  ;;  %s290_s18 = scalar_lea.vmem [#allocation2], %s515_s14  ;;  %p602_p13 = pnand %p601_p12, %p739_p4 }
  0x1a   : > { %s404_s19 = sshll.u32 %s290_s18, 4  ;;  %s604_s11 = scalar_lea.hbm %s823_s6, 16  ;;  %s405_s19 = int_to_ptr.vmem [resolvable:$true] %s404_s19 }
  0x1b   : > { %v322_v2 = vsel %vm320_vm0, %v308_v1, 0  ;;  %p603_p0 = pneg %p602_p13  ;;  %p606_p2 = scmp.lt.s32.totalorder %s604_s11, %s600_s24 }
  0x1c   : > { %331 = vmatpush.bf16.msra.mxu0 %v322_v2 }
  0x1d   : > { %p607_p3 = por %p606_p2, %p605_p1 }
  0x1f   : > { %521 = vmatmul.msk.bf16.vlgmr.msra.gmra.mxu0 %vm316_vm1, %v528_v3  ;;  %p608_p5 = pnand %p607_p3, %p603_p0 }
  0x9c   : > { %v333_v4 = vpop.f32.mrf.mxu0 }
  0x9d   : > { %v340_v8 = vmul.f32 %v338_v5, %v333_v4  ;;  %v343_v10 = vmul.f32 %v339_v6, %v333_v4 }
  0xa4   : > { %v335_v7 = vpop.f32.mrf.mxu0 }
  0xa5   : > { %v341_v9 = vmul.f32 %v339_v6, %v335_v7  ;;  %v344_v11 = vmul.f32 %v338_v5, %v335_v7 }
  0xa7   : > { %v345_v12 = vadd.f32 %v344_v11, %v343_v10  ;;  %v342_v13 = vsub.f32 %v340_v8, %v341_v9 }
  0xa9   : > { %v349_v14 = vpack.c.bf16 %v345_v12, %v345_v12  ;;  %v347_v15 = vpack.c.bf16 %v342_v13, %v342_v13 }
  0xab   : > { %v354_v16 = vsel %vm320_vm0, %v349_v14, 0  ;;  %v373_v17 = vsel %vm320_vm0, %v347_v15, 0 }
  0xac   : > { %363 = vmatpush.bf16.msra.mxu1 %v354_v16  ;;  %382 = vmatpush.bf16.msra.mxu2 %v373_v17 }
  0xaf   : > { %522 = vmatmul.msk.bf16.vlgmr.msra.gmra.mxu1 %vm316_vm1, %v348_v18  ;;  %523 = vmatmul.msk.bf16.vlgmr.msra.gmra.mxu2 %vm316_vm1, %v346_v19 }
 0x12c   : > { %v365_v20 = vpop.f32.mrf.mxu1 }
 0x132   : > { %v384_v21 = vpop.f32.mrf.mxu2 }
 0x133   : > { %v385_v22 = vadd.f32 %v384_v21, %v365_v20 }
 0x134   : > { %v367_v23 = vpop.f32.mrf.mxu1 }
 0x135   : > { %389 = vst.msk [vmem:[%s290_s18] sm:$0xff] %vm388_vm2, %v385_v22 }
 0x136   : > { %611 = shalt.err (!%p608_p5)
}
 0x137   : > { %529 = dma.vmem_to_hbm [thread:$0]  (%p739_p4), %s405_s19, 128, %s407_s20, %s391_s27  }
 0x13a   : > { %v386_v24 = vpop.f32.mrf.mxu2 }
 0x13b PF: > { %p535_p6 = scmp.ge.s32.totalorder %s662_s26, 2  ;;  %s418_s12 = sand.u32 1, %s642_s21  }
 0x13c   : > { %s419_s15 = scalar_lea.sflag [#allocation3], %s418_s12 }
 0x13d   : > { %p532_p7 = pnand %p535_p6, %p746_p8 }
 0x13f   : > { %p533_p9 = pneg %p532_p7 }
 0x141   : > { %637 = dma.done.wait (%p533_p9), %s419_s15, 128  }
 0x142   : > { %639 = vsyncadd (%p533_p9), %s419_s15, 4294967168  ;;  %s19_s26 = sadd.s32 1, %s662_s26   ;;  %s826_s21 = smov %s646_s22 }
 0x143   : > { %p16_p10 = scmp.ge.s32.totalorder %s19_s26, 4   ;;  %s827_s22 = smov %s650_s23 }
 0x144   : > { %s828_s23 = smov %s752_s10  ;;  %s829_s24 = smov %s658_s25 }
 0x145   : > { %s830_s25 = smov %s832_s29  ;;  %18 = sbr.rel (!%p16_p10) target bundleno = 4 (0x4), region = 85 }
 0x14a   :  { %425 = vsyncpa [#allocation3], 1 }
 0x14b   :  { %427 = vsyncpa [#allocation3 + $0x1], 1 }

</bundles_post_ra>
